<compile_context>
chip_gen: v6e
topology: v6e:2x2x1
jax: 0.10.0
libtpu: 0.0.40
codegen_flags: <defaults>
</compile_context>

<pallas_src>
import functools

import jax
import jax.numpy as jnp
from jax.experimental import pallas as pl
from jax.experimental.pallas import tpu as pltpu


def _round_up(x, m):
    return ((x + m - 1) // m) * m


def _recommender_kernel(u_ref, m_ref, bias_ref, w_ref, o_ref):
    # VPU elementwise interaction on lane-packed rows: [TP, L] (L = p*D = 128).
    um = u_ref[...] * m_ref[...]
    # MXU block-diagonal weighted reduce: [TP, L] @ [L, p] -> [TP, p].
    dot = jnp.dot(um, w_ref[...], preferred_element_type=jnp.float32)
    # Pre-combined bias stream already holds (ub+mb)*sum(w) + b_out, packed [TP, p].
    o_ref[...] = (dot + bias_ref[...]).astype(o_ref.dtype)


@functools.partial(jax.jit, static_argnames=("block_rows",))
def _forward_packed(u_packed, m_packed, bias_packed, wblock, *, block_rows):
    """u_packed/m_packed: [P, L] f32 (lane-packed embeddings);
    bias_packed: [P, p] f32 (pre-combined bias); wblock: [L, p] f32.
    Returns [P, p] f32."""
    P, L = u_packed.shape
    p = wblock.shape[1]
    nb = pl.cdiv(P, block_rows)   # ragged tail handled by Pallas boundary masking
    return pl.pallas_call(
        _recommender_kernel,
        out_shape=jax.ShapeDtypeStruct((P, p), jnp.float32),
        grid=(nb,),
        in_specs=[
            pl.BlockSpec((block_rows, L), lambda i: (i, 0)),   # user emb (packed)
            pl.BlockSpec((block_rows, L), lambda i: (i, 0)),   # movie emb (packed)
            pl.BlockSpec((block_rows, p), lambda i: (i, 0)),   # combined bias (packed)
            pl.BlockSpec((L, p), lambda i: (0, 0)),            # block-diag out weight
        ],
        out_specs=pl.BlockSpec((block_rows, p), lambda i: (i, 0)),
        compiler_params=pltpu.CompilerParams(
            dimension_semantics=("parallel",)),
    )(u_packed, m_packed, bias_packed, wblock)


def init_params(key, num_users, num_movies, embedding_dim):
    """Deterministic parameter init mirroring the PyTorch __init__."""
    ks = jax.random.split(key, 6)
    user_embedding = jax.random.uniform(ks[0], (num_users, embedding_dim),
                                        jnp.float32, 0.0, 0.05)
    movie_embedding = jax.random.uniform(ks[1], (num_movies, embedding_dim),
                                         jnp.float32, 0.0, 0.05)
    user_embedding_bias = jax.random.uniform(ks[2], (num_users, 1),
                                             jnp.float32, -0.01, 0.01)
    movie_embedding_bias = jax.random.uniform(ks[3], (num_movies, 1),
                                              jnp.float32, -0.01, 0.01)
    # nn.Linear(embedding_dim, 1) default init: U(-1/sqrt(D), 1/sqrt(D))
    bound = 1.0 / (embedding_dim ** 0.5)
    out_w = jax.random.uniform(ks[4], (1, embedding_dim), jnp.float32, -bound, bound)
    out_b = jax.random.uniform(ks[5], (1,), jnp.float32, -bound, bound)
    return dict(user_embedding=user_embedding,
                movie_embedding=movie_embedding,
                user_embedding_bias=user_embedding_bias,
                movie_embedding_bias=movie_embedding_bias,
                out_w=out_w, out_b=out_b)


def recommender_apply(params, user_ids, movie_tags, *, block_b_max=16384):
    """Forward pass. block_b_max = logical batch rows per grid step."""
    B = user_ids.shape[0]
    D = params["user_embedding"].shape[1]

    # Lane-pack factor: fold p logical rows into one 128-lane row when D | 128.
    p = (128 // D) if (D <= 128 and 128 % D == 0) else 1
    L = p * D

    # Pad the id vectors (cheap) so packed row count is a multiple of 8
    # (sublane constraint); padded rows use id 0 and are sliced off at the end.
    # Note: jnp.take clamps out-of-range ids, unlike the PyTorch reference.
    Bp = _round_up(max(B, 1), p * 8)
    if Bp != B:
        pad = Bp - B
        user_ids = jnp.concatenate([user_ids, jnp.zeros((pad,), user_ids.dtype)])
        movie_tags = jnp.concatenate([movie_tags, jnp.zeros((pad,), movie_tags.dtype)])

    # Embedding lookups (XLA gathers; see TODO(synk) above) + free packing reshape.
    ue = jnp.take(params["user_embedding"], user_ids, axis=0)        # [Bp, D]
    me = jnp.take(params["movie_embedding"], movie_tags, axis=0)     # [Bp, D]
    ub = jnp.take(params["user_embedding_bias"], user_ids, axis=0)   # [Bp, 1]
    mb = jnp.take(params["movie_embedding_bias"], movie_tags, axis=0)

    u_packed = ue.astype(jnp.float32).reshape(Bp // p, L)
    m_packed = me.astype(jnp.float32).reshape(Bp // p, L)

    w = params["out_w"].reshape(-1).astype(jnp.float32)               # [D]
    w_sum = jnp.sum(w)
    b_out = params["out_b"].reshape(()).astype(jnp.float32)
    # (u*m + ub + mb)·w + b == (u*m)·w + (ub+mb)*sum(w) + b  (fp order differs).
    bias_packed = ((ub + mb).astype(jnp.float32) * w_sum + b_out).reshape(Bp // p, p)

    # Block-diagonal output weight: wblock[j*D:(j+1)*D, j] = w.
    eye = jnp.eye(p, dtype=jnp.float32)
    wblock = (eye[:, None, :] * w[None, :, None]).reshape(L, p)       # [L, p]

    P = Bp // p
    block_rows = min(max(8, (block_b_max // p) // 8 * 8), P)

    out_packed = _forward_packed(u_packed, m_packed, bias_packed, wblock,
                                 block_rows=block_rows)                # [P, p]
    return out_packed.reshape(Bp, 1)[:B]


def _reference(params, user_ids, movie_tags):
    ue = params["user_embedding"][user_ids]
    me = params["movie_embedding"][movie_tags]
    ub = params["user_embedding_bias"][user_ids]
    mb = params["movie_embedding_bias"][movie_tags]
    inter = ue * me + ub + mb
    return inter @ params["out_w"].T + params["out_b"]


if __name__ == "__main__":
    num_users, num_movies, embedding_dim = 50, 60, 32
    batch = 8

    key = jax.random.PRNGKey(0)
    pkey, ukey, mkey, ukey2, mkey2 = jax.random.split(key, 5)
    params = init_params(pkey, num_users, num_movies, embedding_dim)

    # --- small sanity-size run (single grid step) ---
    user_ids = jax.random.randint(ukey, (batch,), 0, num_users, jnp.int32)
    movie_tags = jax.random.randint(mkey, (batch,), 0, num_movies, jnp.int32)

    out = recommender_apply(params, user_ids, movie_tags)
    out = jax.block_until_ready(out)
    assert out.shape == (batch, 1), out.shape

    ref = _reference(params, user_ids, movie_tags)
    assert jnp.allclose(out, ref, atol=1e-5, rtol=1e-5), (out, ref)

    # --- multi-block run with a ragged tail (exercises masking + packing) ---
    big_b = 300
    user_ids_b = jax.random.randint(ukey2, (big_b,), 0, num_users, jnp.int32)
    movie_tags_b = jax.random.randint(mkey2, (big_b,), 0, num_movies, jnp.int32)

    out_b = recommender_apply(params, user_ids_b, movie_tags_b, block_b_max=128)
    out_b = jax.block_until_ready(out_b)
    assert out_b.shape == (big_b, 1), out_b.shape

    ref_b = _reference(params, user_ids_b, movie_tags_b)
    assert jnp.allclose(out_b, ref_b, atol=1e-5, rtol=1e-5), "ragged-tail mismatch"

    print("KERNEL_OK")
</pallas_src>

<mosaic_0001>
module attributes {stable_mosaic.version = 11 : i64} {
  func.func @_recommender_kernel(%arg0: i32, %arg1: memref<8x128xf32, #tpu.memory_space<vmem>>, %arg2: memref<8x128xf32, #tpu.memory_space<vmem>>, %arg3: memref<8x4xf32, #tpu.memory_space<vmem>>, %arg4: memref<128x4xf32, #tpu.memory_space<vmem>>, %arg5: memref<8x4xf32, #tpu.memory_space<vmem>>) attributes {dimension_semantics = [#tpu.dimension_semantics<parallel>], iteration_bounds = array<i64: 1>, scalar_prefetch = 0 : i64, scratch_operands = 0 : i64, tpu.core_type = #tpu.core_type<tc>, window_params = [{transform_indices = @transform_0, window_bounds = array<i64: 8, 128>}, {transform_indices = @transform_1, window_bounds = array<i64: 8, 128>}, {transform_indices = @transform_2, window_bounds = array<i64: 8, 4>}, {pipeline_mode = #tpu.pipeline_mode<synchronous>, transform_indices = @transform_3, window_bounds = array<i64: 128, 4>}, {transform_indices = @transform_4, window_bounds = array<i64: 8, 4>}]} {
    %c0 = arith.constant 0 : index
    %c0_0 = arith.constant 0 : index
    %0 = vector.load %arg1[%c0, %c0_0] : memref<8x128xf32, #tpu.memory_space<vmem>>, vector<8x128xf32>
    %c0_1 = arith.constant 0 : index
    %c0_2 = arith.constant 0 : index
    %1 = vector.load %arg2[%c0_1, %c0_2] : memref<8x128xf32, #tpu.memory_space<vmem>>, vector<8x128xf32>
    %2 = arith.mulf %0, %1 : vector<8x128xf32>
    %c0_3 = arith.constant 0 : index
    %c0_4 = arith.constant 0 : index
    %3 = vector.load %arg4[%c0_3, %c0_4] : memref<128x4xf32, #tpu.memory_space<vmem>>, vector<128x4xf32>
    %cst = arith.constant dense<0.000000e+00> : vector<8x4xf32>
    %4 = tpu.matmul %2, %3, %cst {dimension_numbers = #tpu.dot_dimension_numbers<[1], [0], [0], [1], [0, 0, 1, 1], [], []>} : vector<8x128xf32>, vector<128x4xf32>, vector<8x4xf32> -> vector<8x4xf32>
    %c0_5 = arith.constant 0 : index
    %c0_6 = arith.constant 0 : index
    %5 = vector.load %arg3[%c0_5, %c0_6] : memref<8x4xf32, #tpu.memory_space<vmem>>, vector<8x4xf32>
    %6 = arith.addf %4, %5 : vector<8x4xf32>
    %c0_7 = arith.constant 0 : index
    %c0_8 = arith.constant 0 : index
    %7 = vector.load %arg5[%c0_7, %c0_8] : memref<8x4xf32, #tpu.memory_space<vmem>>, vector<8x4xf32>
    tpu.vector_store %arg5[%c0_7, %c0_8], %6 {strides = array<i32>} : memref<8x4xf32, #tpu.memory_space<vmem>>, vector<8x4xf32>,
    return
  }
  func.func @transform_0(%arg0: i32) -> (i32, i32) {
    %c0_i32 = arith.constant 0 : i32
    %c0_i32_0 = arith.constant 0 : i32
    return %arg0, %c0_i32 : i32, i32
  }
  func.func @transform_1(%arg0: i32) -> (i32, i32) {
    %c0_i32 = arith.constant 0 : i32
    %c0_i32_0 = arith.constant 0 : i32
    return %arg0, %c0_i32 : i32, i32
  }
  func.func @transform_2(%arg0: i32) -> (i32, i32) {
    %c0_i32 = arith.constant 0 : i32
    %c0_i32_0 = arith.constant 0 : i32
    return %arg0, %c0_i32 : i32, i32
  }
  func.func @transform_3(%arg0: i32) -> (i32, i32) {
    %c0_i32 = arith.constant 0 : i32
    %c0_i32_0 = arith.constant 0 : i32
    %c0_i32_1 = arith.constant 0 : i32
    return %c0_i32, %c0_i32_0 : i32, i32
  }
  func.func @transform_4(%arg0: i32) -> (i32, i32) {
    %c0_i32 = arith.constant 0 : i32
    %c0_i32_0 = arith.constant 0 : i32
    return %arg0, %c0_i32 : i32, i32
  }
}

</mosaic_0001>

<bundles_post_ra>
// kernel: _forward_packed.1
= control target key start
LH: loop header
LB: loop body
LE: loop exit
PB: predicated region body
PF: predicated region fallthrough
CT: control target
= control target key end

     0   :  { %v167_v0 = vmov 0.0   ;;  %vm168_vm0 = vmmov 0   ;;  %vm107_vm1 = vcmask 31744   ;;  %s254_s3 = inlined_call_operand.vmem [shape: f32[128,4], index: 3, kind: input, shape index: {}]   ;;  %s255_s0 = inlined_call_operand.vmem [shape: f32[8,128], index: 0, kind: input, shape index: {}]   ;;  %s256_s1 = inlined_call_operand.vmem [shape: f32[8,128], index: 1, kind: input, shape index: {}]   ;;  %s257_s2 = inlined_call_operand.vmem [shape: f32[8,4], index: 2, kind: input, shape index: {}]   ;;  %s258_s4 = inlined_call_operand.vmem [shape: f32[8,4], index: 4, kind: output, shape index: {}]  }
   0x1   :  { %130 = vmatprep.subr.mxu0 %v167_v0  ;;  %v35_v1 = vld [vmem:[%s254_s3 + $0x78] sm:$0xff]  ;;  %v34_v2 = vld [vmem:[%s254_s3 + $0x70] sm:$0xff]  ;;  %162 = vmatprep.mubr.msk.f32.mxu0 %vm168_vm0, %v167_v0  ;;  %v33_v3 = vld [vmem:[%s254_s3 + $0x68] sm:$0xff] }
   0x2   :  { %131 = vmatpush3.msra.mxu0 %v35_v1  ;;  %v32_v4 = vld [vmem:[%s254_s3 + $0x60] sm:$0xff]  ;;  %v31_v5 = vld [vmem:[%s254_s3 + $0x58] sm:$0xff]  ;;  %v30_v6 = vld [vmem:[%s254_s3 + $0x50] sm:$0xff] }
   0x3   :  { %132 = vmatprep.subr.mxu0 %v167_v0  ;;  %v29_v7 = vld [vmem:[%s254_s3 + $0x48] sm:$0xff]  ;;  %v28_v8 = vld [vmem:[%s254_s3 + $0x40] sm:$0xff]  ;;  %v27_v9 = vld [vmem:[%s254_s3 + $0x38] sm:$0xff] }
   0x4   :  { %133 = vmatpush3.msra.mxu0 %v34_v2  ;;  %v26_v10 = vld [vmem:[%s254_s3 + $0x30] sm:$0xff]  ;;  %v25_v11 = vld [vmem:[%s254_s3 + $0x28] sm:$0xff]  ;;  %v24_v12 = vld [vmem:[%s254_s3 + $0x20] sm:$0xff] }
   0x5   :  { %134 = vmatprep.subr.mxu0 %v167_v0  ;;  %v23_v13 = vld [vmem:[%s254_s3 + $0x18] sm:$0xff]  ;;  %v22_v14 = vld [vmem:[%s254_s3 + $0x10] sm:$0xff]  ;;  %v17_v15 = vld [vmem:[%s255_s0] sm:$0xff] }
   0x6   :  { %135 = vmatpush3.msra.mxu0 %v33_v3  ;;  %v18_v16 = vld [vmem:[%s256_s1] sm:$0xff]  ;;  %v21_v17 = vld [vmem:[%s254_s3 + $0x8] sm:$0xff] }
   0x7   :  { %136 = vmatprep.subr.mxu0 %v167_v0  ;;  %v20_v18 = vld [vmem:[%s254_s3] sm:$0xff]  ;;  %v19_v19 = vmul.f32 %v18_v16, %v17_v15 }
   0x8   :  { %137 = vmatpush3.msra.mxu0 %v32_v4  ;;  %v36_v20 = vld [vmem:[%s257_s2] sm:$0xff] }
   0x9   :  { %138 = vmatprep.subr.mxu0 %v167_v0 }
   0xa   :  { %139 = vmatpush3.msra.mxu0 %v31_v5 }
   0xb   :  { %140 = vmatprep.subr.mxu0 %v167_v0 }
   0xc   :  { %141 = vmatpush3.msra.mxu0 %v30_v6 }
   0xd   :  { %142 = vmatprep.subr.mxu0 %v167_v0 }
   0xe   :  { %143 = vmatpush3.msra.mxu0 %v29_v7 }
   0xf   :  { %144 = vmatprep.subr.mxu0 %v167_v0 }
  0x10   :  { %145 = vmatpush3.msra.mxu0 %v28_v8 }
  0x11   :  { %146 = vmatprep.subr.mxu0 %v167_v0 }
  0x12   :  { %147 = vmatpush3.msra.mxu0 %v27_v9 }
  0x13   :  { %148 = vmatprep.subr.mxu0 %v167_v0 }
  0x14   :  { %149 = vmatpush3.msra.mxu0 %v26_v10 }
  0x15   :  { %150 = vmatprep.subr.mxu0 %v167_v0 }
  0x16   :  { %151 = vmatpush3.msra.mxu0 %v25_v11 }
  0x17   :  { %152 = vmatprep.subr.mxu0 %v167_v0 }
  0x18   :  { %153 = vmatpush3.msra.mxu0 %v24_v12 }
  0x19   :  { %154 = vmatprep.subr.mxu0 %v167_v0 }
  0x1a   :  { %155 = vmatpush3.msra.mxu0 %v23_v13 }
  0x1b   :  { %156 = vmatprep.subr.mxu0 %v167_v0 }
  0x1c   :  { %157 = vmatpush3.msra.mxu0 %v22_v14 }
  0x1d   :  { %158 = vmatprep.subr.mxu0 %v167_v0 }
  0x1e   :  { %159 = vmatpush3.msra.mxu0 %v21_v17 }
  0x1f   :  { %160 = vmatprep.subr.mxu0 %v167_v0 }
  0x20   :  { %161 = vmatpush3.msra.mxu0 %v20_v18 }
  0x21   :  { %163 = vmatmul.mubr.f32.vlgmr.msra.gmra.mxu0 %v19_v19 }
  0xe1   :  { %v103_v21 = vpop.f32.mrf.mxu0 }
  0xe2   :  { %v104_v22 = vadd.f32 %v103_v21, %v36_v20 }
  0xe3   :  { %v164_v23 = vpop.f32.mrf.mxu0 }
  0xe4   :  { %108 = vst.msk [vmem:[%s258_s4] sm:$0xff] %vm107_vm1, %v104_v22 }

</bundles_post_ra>
